<compile_context>
chip_gen: v5e
topology: v5e:2x2
jax: 0.10.0
libtpu: 0.0.40
codegen_flags: <defaults>
</compile_context>

<pallas_src>
import math

import jax
import jax.numpy as jnp
from jax.experimental import pallas as pl
from jax.experimental.pallas import tpu as pltpu


def _round_up(x: int, m: int) -> int:
    return ((x + m - 1) // m) * m


def _pad2d(a, rows: int, cols: int):
    r, c = a.shape
    if r == rows and c == cols:
        return a
    return jnp.pad(a, ((0, rows - r), (0, cols - c)))


def _nbytes(shape, dtype) -> int:
    return int(math.prod(shape)) * jnp.dtype(dtype).itemsize


def mlp_kernel(x_ref, w1_ref, b1_ref, w2_ref, b2_ref, o_ref, acc_ref):
    """One (batch_tile x hidden_tile) step of the fused MLP.

    Grid = (batch_steps, hidden_steps); hidden is the reduction axis (last,
    "arbitrary"). acc_ref is an f32 VMEM accumulator of shape
    (batch_tile, D_out_p), initialized with the broadcast output bias.
    """
    hk = pl.program_id(1)

    @pl.when(hk == 0)
    def _init():
        acc_ref[...] = jnp.broadcast_to(
            b2_ref[...].astype(jnp.float32), acc_ref.shape
        )

    # First matmul on the MXU (f32 accumulation), bias-add + tanh in f32 (EUP).
    h = jnp.dot(x_ref[...], w1_ref[...], preferred_element_type=jnp.float32)
    h = jnp.tanh(h + b1_ref[...].astype(jnp.float32))

    # Second matmul: accumulate this hidden chunk's contribution.
    acc_ref[...] += jnp.dot(
        h.astype(w2_ref.dtype), w2_ref[...], preferred_element_type=jnp.float32
    )

    @pl.when(hk == pl.num_programs(1) - 1)
    def _finalize():
        o_ref[...] = acc_ref[...].astype(o_ref.dtype)


def mlp_forward(x, w1, b1, w2, b2, *, batch_tile=None, hidden_tile=None,
                mxu_dtype=jnp.bfloat16):
    """Fused MLP forward: tanh(x @ w1 + b1) @ w2 + b2.

    x: (B, D_in); w1: (D_in, H); b1: (H,) or (1, H); w2: (H, D_out); b2: (D_out,).
    mxu_dtype: dtype fed to the MXU (bf16 default for v6e/v7x peak; use
    jnp.float32 for an exact path). Accumulation is always f32.
    """
    B, D_in = x.shape
    D_in_w, H = w1.shape
    H_w, D_out = w2.shape
    assert D_in_w == D_in and H_w == H
    b1 = jnp.reshape(b1, (1, H))
    b2 = jnp.reshape(b2, (1, D_out))
    out_dtype = x.dtype

    # --- Lane-dense padding: all feature dims to multiples of 128. ---
    D_in_p = _round_up(D_in, 128)
    D_out_p = _round_up(D_out, 128)
    H_p = _round_up(H, 128)

    if hidden_tile is None:
        hidden_tile = min(512, H_p)
    hidden_tile = _round_up(min(hidden_tile, H_p), 128)
    H_p = _round_up(H_p, hidden_tile)           # hidden_tile must divide H_p

    if batch_tile is None:
        batch_tile = 256 if B >= 2048 else 128  # >=4-8 grid steps for large B
    batch_tile = _round_up(batch_tile, 16)      # sublane-safe for f32 and bf16
    B_p = _round_up(B, batch_tile)

    # Zero-pad (zeros in padded K rows/cols contribute nothing; padded batch rows
    # and padded output columns are sliced off below).
    x_p = _pad2d(x, B_p, D_in_p)
    w1_p = _pad2d(w1, D_in_p, H_p)
    b1_p = _pad2d(b1, 1, H_p)
    w2_p = _pad2d(w2, H_p, D_out_p)
    b2_p = _pad2d(b2, 1, D_out_p)

    # MXU input dtype (biases / accumulation stay f32).
    x_p = x_p.astype(mxu_dtype)
    w1_p = w1_p.astype(mxu_dtype)
    w2_p = w2_p.astype(mxu_dtype)
    b1_p = b1_p.astype(jnp.float32)
    b2_p = b2_p.astype(jnp.float32)

    grid = (B_p // batch_tile, H_p // hidden_tile)

    # Explicit VMEM budget: 2x (double-buffer) for every BlockSpec'd tile + scratch.
    est = 2 * (
        _nbytes((batch_tile, D_in_p), mxu_dtype)
        + _nbytes((D_in_p, hidden_tile), mxu_dtype)
        + _nbytes((1, hidden_tile), jnp.float32)
        + _nbytes((hidden_tile, D_out_p), mxu_dtype)
        + _nbytes((1, D_out_p), jnp.float32)
        + _nbytes((batch_tile, D_out_p), out_dtype)
    ) + _nbytes((batch_tile, D_out_p), jnp.float32)
    vmem_limit = int(min(max(2 * est, 32 << 20), 100 << 20))

    # NOTE: weights/biases re-use the same block across the batch axis (no re-DMA);
    # if VMEM gets tight for very large weights, pipeline_mode=pl.Buffered(1) on the
    # weight specs (or a manual one-time copy from pl.ANY) would halve their footprint.
    out_p = pl.pallas_call(
        mlp_kernel,
        out_shape=jax.ShapeDtypeStruct((B_p, D_out_p), out_dtype),
        grid_spec=pltpu.PrefetchScalarGridSpec(
            num_scalar_prefetch=0,
            grid=grid,
            in_specs=[
                pl.BlockSpec((batch_tile, D_in_p), lambda i, k: (i, 0)),   # X tile
                pl.BlockSpec((D_in_p, hidden_tile), lambda i, k: (0, k)),  # W1 chunk
                pl.BlockSpec((1, hidden_tile), lambda i, k: (0, k)),       # b1 chunk
                pl.BlockSpec((hidden_tile, D_out_p), lambda i, k: (k, 0)), # W2 chunk
                pl.BlockSpec((1, D_out_p), lambda i, k: (0, 0)),           # b2
            ],
            out_specs=pl.BlockSpec((batch_tile, D_out_p), lambda i, k: (i, 0)),
            scratch_shapes=[pltpu.VMEM((batch_tile, D_out_p), jnp.float32)],
        ),
        compiler_params=pltpu.CompilerParams(
            dimension_semantics=("parallel", "arbitrary"),
            vmem_limit_bytes=vmem_limit,
        ),
    )(x_p, w1_p, b1_p, w2_p, b2_p)

    return out_p[:B, :D_out]


if __name__ == "__main__":
    # Small shapes consistent with MLP(input_dim, hidden_dim, output_dim).
    batch, input_dim, hidden_dim, output_dim = 8, 32, 64, 16

    key = jax.random.PRNGKey(0)
    kx, kw1, kb1, kw2, kb2 = jax.random.split(key, 5)

    x = jax.random.normal(kx, (batch, input_dim), dtype=jnp.float32)

    # Deterministic init mimicking nn.Linear's uniform(-1/sqrt(fan_in), 1/sqrt(fan_in)),
    # stored (in, out) so the kernel computes X @ W + b.
    bound1 = 1.0 / jnp.sqrt(input_dim)
    w1 = jax.random.uniform(kw1, (input_dim, hidden_dim), jnp.float32, -bound1, bound1)
    b1 = jax.random.uniform(kb1, (hidden_dim,), jnp.float32, -bound1, bound1)

    bound2 = 1.0 / jnp.sqrt(hidden_dim)
    w2 = jax.random.uniform(kw2, (hidden_dim, output_dim), jnp.float32, -bound2, bound2)
    b2 = jax.random.uniform(kb2, (output_dim,), jnp.float32, -bound2, bound2)

    ref = jnp.tanh(x @ w1 + b1[None, :]) @ w2 + b2[None, :]

    # Exact-ish f32 MXU path.
    out_f32 = jax.block_until_ready(
        mlp_forward(x, w1, b1, w2, b2, mxu_dtype=jnp.float32)
    )
    assert out_f32.shape == (batch, output_dim)
    assert jnp.allclose(out_f32, ref, atol=1e-4, rtol=1e-4)

    # Default bf16-MXU path (f32 accumulation) — the fast path on v6e/v7x.
    out_bf16 = jax.block_until_ready(mlp_forward(x, w1, b1, w2, b2))
    assert out_bf16.shape == (batch, output_dim)
    assert jnp.allclose(out_bf16, ref, atol=5e-2, rtol=5e-2)

    print("KERNEL_OK")
</pallas_src>

<mosaic_0001>
module attributes {stable_mosaic.version = 11 : i64} {
  func.func @mlp_kernel(%arg0: i32, %arg1: i32, %arg2: memref<128x128xf32, #tpu.memory_space<vmem>>, %arg3: memref<128x128xf32, #tpu.memory_space<vmem>>, %arg4: memref<1x128xf32, #tpu.memory_space<vmem>>, %arg5: memref<128x128xf32, #tpu.memory_space<vmem>>, %arg6: memref<1x128xf32, #tpu.memory_space<vmem>>, %arg7: memref<128x128xf32, #tpu.memory_space<vmem>>, %arg8: memref<128x128xf32, #tpu.memory_space<vmem>>) attributes {dimension_semantics = [#tpu.dimension_semantics<parallel>, #tpu.dimension_semantics<arbitrary>], iteration_bounds = array<i64: 1, 1>, scalar_prefetch = 0 : i64, scratch_operands = 1 : i64, tpu.core_type = #tpu.core_type<tc>, window_params = [{transform_indices = @transform_0, window_bounds = array<i64: 128, 128>}, {transform_indices = @transform_1, window_bounds = array<i64: 128, 128>}, {transform_indices = @transform_2, window_bounds = array<i64: 1, 128>}, {transform_indices = @transform_3, window_bounds = array<i64: 128, 128>}, {pipeline_mode = #tpu.pipeline_mode<synchronous>, transform_indices = @transform_4, window_bounds = array<i64: 1, 128>}, {transform_indices = @transform_5, window_bounds = array<i64: 128, 128>}]} {
    %c0_i32 = arith.constant 0 : i32
    %0 = arith.cmpi eq, %arg1, %c0_i32 : i32
    %1 = arith.extui %0 : i1 to i32
    %c0_i32_0 = arith.constant 0 : i32
    %2 = arith.cmpi ne, %1, %c0_i32_0 : i32
    scf.if %2 {
      %c0_15 = arith.constant 0 : index
      %c0_16 = arith.constant 0 : index
      %18 = vector.load %arg6[%c0_15, %c0_16] : memref<1x128xf32, #tpu.memory_space<vmem>>, vector<1x128xf32>
      %19 = vector.shape_cast %18 : vector<1x128xf32> to vector<1x128xf32>
      %20 = vector.broadcast %19 : vector<1x128xf32> to vector<128x128xf32>
      %c0_17 = arith.constant 0 : index
      %c0_18 = arith.constant 0 : index
      %21 = vector.load %arg8[%c0_17, %c0_18] : memref<128x128xf32, #tpu.memory_space<vmem>>, vector<128x128xf32>
      tpu.vector_store %arg8[%c0_17, %c0_18], %20 {strides = array<i32>} : memref<128x128xf32, #tpu.memory_space<vmem>>, vector<128x128xf32>,
    } else {
    }
    %c0 = arith.constant 0 : index
    %c0_1 = arith.constant 0 : index
    %3 = vector.load %arg2[%c0, %c0_1] : memref<128x128xf32, #tpu.memory_space<vmem>>, vector<128x128xf32>
    %c0_2 = arith.constant 0 : index
    %c0_3 = arith.constant 0 : index
    %4 = vector.load %arg3[%c0_2, %c0_3] : memref<128x128xf32, #tpu.memory_space<vmem>>, vector<128x128xf32>
    %cst = arith.constant dense<0.000000e+00> : vector<128x128xf32>
    %5 = tpu.matmul %3, %4, %cst {dimension_numbers = #tpu.dot_dimension_numbers<[1], [0], [0], [1], [0, 0, 1, 1], [], []>} : vector<128x128xf32>, vector<128x128xf32>, vector<128x128xf32> -> vector<128x128xf32>
    %c0_4 = arith.constant 0 : index
    %c0_5 = arith.constant 0 : index
    %6 = vector.load %arg4[%c0_4, %c0_5] : memref<1x128xf32, #tpu.memory_space<vmem>>, vector<1x128xf32>
    %7 = vector.broadcast %6 : vector<1x128xf32> to vector<128x128xf32>
    %8 = arith.addf %5, %7 : vector<128x128xf32>
    %9 = math.tanh %8 : vector<128x128xf32>
    %c0_6 = arith.constant 0 : index
    %c0_7 = arith.constant 0 : index
    %10 = vector.load %arg8[%c0_6, %c0_7] : memref<128x128xf32, #tpu.memory_space<vmem>>, vector<128x128xf32>
    %c0_8 = arith.constant 0 : index
    %c0_9 = arith.constant 0 : index
    %11 = vector.load %arg5[%c0_8, %c0_9] : memref<128x128xf32, #tpu.memory_space<vmem>>, vector<128x128xf32>
    %cst_10 = arith.constant dense<0.000000e+00> : vector<128x128xf32>
    %12 = tpu.matmul %9, %11, %cst_10 {dimension_numbers = #tpu.dot_dimension_numbers<[1], [0], [0], [1], [0, 0, 1, 1], [], []>} : vector<128x128xf32>, vector<128x128xf32>, vector<128x128xf32> -> vector<128x128xf32>
    %13 = arith.addf %10, %12 : vector<128x128xf32>
    %c0_11 = arith.constant 0 : index
    %c0_12 = arith.constant 0 : index
    %14 = vector.load %arg8[%c0_11, %c0_12] : memref<128x128xf32, #tpu.memory_space<vmem>>, vector<128x128xf32>
    tpu.vector_store %arg8[%c0_11, %c0_12], %13 {strides = array<i32>} : memref<128x128xf32, #tpu.memory_space<vmem>>, vector<128x128xf32>,
    %c0_i32_13 = arith.constant 0 : i32
    %15 = arith.cmpi eq, %arg1, %c0_i32_13 : i32
    %16 = arith.extui %15 : i1 to i32
    %c0_i32_14 = arith.constant 0 : i32
    %17 = arith.cmpi ne, %16, %c0_i32_14 : i32
    scf.if %17 {
      %c0_15 = arith.constant 0 : index
      %c0_16 = arith.constant 0 : index
      %18 = vector.load %arg8[%c0_15, %c0_16] : memref<128x128xf32, #tpu.memory_space<vmem>>, vector<128x128xf32>
      %c0_17 = arith.constant 0 : index
      %c0_18 = arith.constant 0 : index
      %19 = vector.load %arg7[%c0_17, %c0_18] : memref<128x128xf32, #tpu.memory_space<vmem>>, vector<128x128xf32>
      tpu.vector_store %arg7[%c0_17, %c0_18], %18 {strides = array<i32>} : memref<128x128xf32, #tpu.memory_space<vmem>>, vector<128x128xf32>,
    } else {
    }
    return
  }
  func.func @transform_0(%arg0: i32, %arg1: i32) -> (i32, i32) {
    %c0_i32 = arith.constant 0 : i32
    %c0_i32_0 = arith.constant 0 : i32
    return %arg0, %c0_i32 : i32, i32
  }
  func.func @transform_1(%arg0: i32, %arg1: i32) -> (i32, i32) {
    %c0_i32 = arith.constant 0 : i32
    %c0_i32_0 = arith.constant 0 : i32
    return %c0_i32, %arg1 : i32, i32
  }
  func.func @transform_2(%arg0: i32, %arg1: i32) -> (i32, i32) {
    %c0_i32 = arith.constant 0 : i32
    %c0_i32_0 = arith.constant 0 : i32
    return %c0_i32, %arg1 : i32, i32
  }
  func.func @transform_3(%arg0: i32, %arg1: i32) -> (i32, i32) {
    %c0_i32 = arith.constant 0 : i32
    %c0_i32_0 = arith.constant 0 : i32
    return %arg1, %c0_i32 : i32, i32
  }
  func.func @transform_4(%arg0: i32, %arg1: i32) -> (i32, i32) {
    %c0_i32 = arith.constant 0 : i32
    %c0_i32_0 = arith.constant 0 : i32
    %c0_i32_1 = arith.constant 0 : i32
    return %c0_i32, %c0_i32_0 : i32, i32
  }
  func.func @transform_5(%arg0: i32, %arg1: i32) -> (i32, i32) {
    %c0_i32 = arith.constant 0 : i32
    %c0_i32_0 = arith.constant 0 : i32
    return %arg0, %c0_i32 : i32, i32
  }
}

</mosaic_0001>

<bundles_post_ra>
// kernel: tpu_custom_call.1
= control target key start
LH: loop header
LB: loop body
LE: loop exit
PB: predicated region body
PF: predicated region fallthrough
CT: control target
= control target key end

     0   :  { %10 = vsyncpa [#allocation4], 0  ;;  %s651_s0 = inlined_call_operand.hbm [shape: f32[128,128], index: 0, kind: input, shape index: {}]   ;;  %s652_s1 = inlined_call_operand.hbm [shape: f32[128,128], index: 1, kind: input, shape index: {}]   ;;  %s653_s2 = inlined_call_operand.vmem [shape: f32[1,128], index: 2, kind: input, shape index: {}]   ;;  %s654_s3 = inlined_call_operand.hbm [shape: f32[128,128], index: 3, kind: input, shape index: {}]   ;;  %s655_s4 = inlined_call_operand.vmem [shape: f32[1,128], index: 4, kind: input, shape index: {}]   ;;  %s656_s5 = inlined_call_operand.hbm [shape: f32[128,128], index: 5, kind: output, shape index: {}]  }
   0x1   :  { %11 = vsyncpa [#allocation7], 0 }
   0x2   :  { %12 = vsyncpa [#allocation5], 0  ;;  %s30_s20 = sshll.u32 %s652_s1, 4  ;;  %s567_s21 = smov [#allocation6]   ;;  %s31_s20 = int_to_ptr.hbm [resolvable:$true] %s30_s20 }
   0x3   :  { %s32_s22 = sshll.u32 %s567_s21, 4  ;;  %s17_s25 = sshll.u32 %s651_s0, 4  ;;  %s33_s22 = int_to_ptr.vmem [resolvable:$true] %s32_s22  ;;  %s18_s25 = int_to_ptr.hbm [resolvable:$true] %s17_s25 }
   0x4   :  { %s568_s26 = smov 128   ;;  %s569_s27 = smov 8  }
   0x5   :  { %38 = dma.hbm_to_vmem [thread:$0]  %s31_s20, 2048, %s33_s22, [#allocation7], %s568_s26, %s568_s26, %s569_s27  }
   0x6   :  { %s570_s28 = smov [#allocation3]   ;;  %s45_s1 = sshll.u32 %s654_s3, 4  ;;  %s46_s1 = int_to_ptr.hbm [resolvable:$true] %s45_s1 }
   0x7   :  { %s19_s29 = sshll.u32 %s570_s28, 4  ;;  %s571_s0 = smov [#allocation8]   ;;  %s20_s29 = int_to_ptr.vmem [resolvable:$true] %s19_s29 }
   0x8   :  { %25 = dma.hbm_to_vmem [thread:$0]  %s18_s25, 2048, %s20_s29, [#allocation4], %s568_s26, %s568_s26, %s569_s27  }
   0x9   :  { %s47_s7 = sshll.u32 %s571_s0, 4  ;;  %s48_s7 = int_to_ptr.vmem [resolvable:$true] %s47_s7 }
   0xa   :  { %53 = dma.hbm_to_vmem [thread:$0]  %s46_s1, 2048, %s48_s7, [#allocation7], %s568_s26, %s568_s26, %s569_s27  }
   0xb   :  { %561 = dma.done.wait [#allocation4], 2048  }
   0xc   :  { %562 = vsyncadd [#allocation4], 4294965248 }
   0xd   :  { %563 = dma.done.wait [#allocation7], 4096  }
   0xe   :  { %564 = vsyncadd [#allocation7], 4294963200  ;;  %v123_v0 = vld [vmem:[#allocation6 + $0x78] sm:$0xff]  ;;  %v122_v1 = vld [vmem:[#allocation6 + $0x70] sm:$0xff]  ;;  %s379_s13 = sshll.u32 %s656_s5, 4  ;;  %s380_s13 = int_to_ptr.hbm [resolvable:$true] %s379_s13 }
   0xf   :  { %393 = vmatpush.msra.mxu2 %v123_v0  ;;  %128 = vmatpush.msra.mxu0 %v123_v0  ;;  %v121_v2 = vld [vmem:[#allocation6 + $0x68] sm:$0xff]  ;;  %v120_v3 = vld [vmem:[#allocation6 + $0x60] sm:$0xff]  ;;  %v119_v4 = vld [vmem:[#allocation6 + $0x58] sm:$0xff] }
  0x10   :  { %v118_v5 = vld [vmem:[#allocation6 + $0x50] sm:$0xff]  ;;  %v117_v6 = vld [vmem:[#allocation6 + $0x48] sm:$0xff]  ;;  %v116_v7 = vld [vmem:[#allocation6 + $0x40] sm:$0xff] }
  0x11   :  { %394 = vmatpush.msra.mxu2 %v122_v1  ;;  %129 = vmatpush.msra.mxu0 %v122_v1  ;;  %v115_v8 = vld [vmem:[#allocation6 + $0x38] sm:$0xff]  ;;  %v114_v9 = vld [vmem:[#allocation6 + $0x30] sm:$0xff]  ;;  %v113_v10 = vld [vmem:[#allocation6 + $0x28] sm:$0xff] }
  0x12   :  { %v112_v11 = vld [vmem:[#allocation6 + $0x20] sm:$0xff]  ;;  %v111_v12 = vld [vmem:[#allocation6 + $0x18] sm:$0xff]  ;;  %v110_v13 = vld [vmem:[#allocation6 + $0x10] sm:$0xff] }
  0x13   :  { %395 = vmatpush.msra.mxu2 %v121_v2  ;;  %130 = vmatpush.msra.mxu0 %v121_v2  ;;  %v109_v14 = vld [vmem:[#allocation6 + $0x8] sm:$0xff]  ;;  %v108_v15 = vld [vmem:[#allocation6] sm:$0xff]  ;;  %v102_v20 = vld [vmem:[#allocation3 + $0x50] sm:$0xff] }
  0x14   :  { %v100_v16 = vld [vmem:[#allocation3 + $0x40] sm:$0xff]  ;;  %v101_v18 = vld [vmem:[#allocation3 + $0x48] sm:$0xff]  ;;  %v94_v21 = vld [vmem:[#allocation3 + $0x10] sm:$0xff] }
  0x15   :  { %396 = vmatpush.msra.mxu2 %v120_v3  ;;  %131 = vmatpush.msra.mxu0 %v120_v3  ;;  %v92_v17 = vld [vmem:[#allocation3] sm:$0xff]  ;;  %v93_v19 = vld [vmem:[#allocation3 + $0x8] sm:$0xff]  ;;  %v103_v22 = vld [vmem:[#allocation3 + $0x58] sm:$0xff] }
  0x16   :  { %v95_v23 = vld [vmem:[#allocation3 + $0x18] sm:$0xff]  ;;  %v239_v25 = vld [vmem:[#allocation8 + $0x70] sm:$0xff]  ;;  %v238_v26 = vld [vmem:[#allocation8 + $0x68] sm:$0xff] }
  0x17   :  { %397 = vmatpush.msra.mxu2 %v119_v4  ;;  %132 = vmatpush.msra.mxu0 %v119_v4  ;;  %v240_v24 = vld [vmem:[#allocation8 + $0x78] sm:$0xff]  ;;  %v237_v27 = vld [vmem:[#allocation8 + $0x60] sm:$0xff]  ;;  %v235_v31 = vld [vmem:[#allocation8 + $0x50] sm:$0xff] }
  0x18   :  { %409 = vmatpush.msra.mxu3 %v240_v24  ;;  %241 = vmatpush.msra.mxu1 %v240_v24  ;;  %v104_v28 = vld [vmem:[#allocation3 + $0x60] sm:$0xff]  ;;  %v236_v30 = vld [vmem:[#allocation8 + $0x58] sm:$0xff]  ;;  %v234_v32 = vld [vmem:[#allocation8 + $0x48] sm:$0xff] }
  0x19   :  { %398 = vmatpush.msra.mxu2 %v118_v5  ;;  %133 = vmatpush.msra.mxu0 %v118_v5  ;;  %v96_v29 = vld [vmem:[#allocation3 + $0x20] sm:$0xff]  ;;  %v105_v34 = vld [vmem:[#allocation3 + $0x68] sm:$0xff]  ;;  %v232_v36 = vld [vmem:[#allocation8 + $0x38] sm:$0xff] }
  0x1a   :  { %410 = vmatpush.msra.mxu3 %v239_v25  ;;  %242 = vmatpush.msra.mxu1 %v239_v25  ;;  %v233_v33 = vld [vmem:[#allocation8 + $0x40] sm:$0xff]  ;;  %v97_v35 = vld [vmem:[#allocation3 + $0x28] sm:$0xff]  ;;  %v231_v37 = vld [vmem:[#allocation8 + $0x30] sm:$0xff] }
  0x1b   :  { %399 = vmatpush.msra.mxu2 %v117_v6  ;;  %134 = vmatpush.msra.mxu0 %v117_v6  ;;  %v230_v38 = vld [vmem:[#allocation8 + $0x28] sm:$0xff]  ;;  %v106_v39 = vld [vmem:[#allocation3 + $0x70] sm:$0xff]  ;;  %v107_v41 = vld [vmem:[#allocation3 + $0x78] sm:$0xff] }
  0x1c   :  { %411 = vmatpush.msra.mxu3 %v238_v26  ;;  %243 = vmatpush.msra.mxu1 %v238_v26  ;;  %v98_v40 = vld [vmem:[#allocation3 + $0x30] sm:$0xff]  ;;  %v99_v42 = vld [vmem:[#allocation3 + $0x38] sm:$0xff]  ;;  %v229_v43 = vld [vmem:[#allocation8 + $0x20] sm:$0xff] }
  0x1d   :  { %400 = vmatpush.msra.mxu2 %v116_v7  ;;  %135 = vmatpush.msra.mxu0 %v116_v7  ;;  %v228_v44 = vld [vmem:[#allocation8 + $0x18] sm:$0xff]  ;;  %v227_v45 = vld [vmem:[#allocation8 + $0x10] sm:$0xff]  ;;  %v226_v46 = vld [vmem:[#allocation8 + $0x8] sm:$0xff] }
  0x1e   :  { %412 = vmatpush.msra.mxu3 %v237_v27  ;;  %244 = vmatpush.msra.mxu1 %v237_v27  ;;  %v225_v47 = vld [vmem:[#allocation8] sm:$0xff] }
  0x1f   :  { %401 = vmatpush.msra.mxu2 %v115_v8  ;;  %136 = vmatpush.msra.mxu0 %v115_v8  ;;  %v624_v48 = vld [vmem:[%s653_s2] ss:$0 sm:$0xff] }
  0x20   :  { %413 = vmatpush.msra.mxu3 %v236_v30  ;;  %245 = vmatpush.msra.mxu1 %v236_v30 }
  0x21   :  { %402 = vmatpush.msra.mxu2 %v114_v9  ;;  %137 = vmatpush.msra.mxu0 %v114_v9 }
  0x22   :  { %414 = vmatpush.msra.mxu3 %v235_v31  ;;  %246 = vmatpush.msra.mxu1 %v235_v31 }
  0x23   :  { %403 = vmatpush.msra.mxu2 %v113_v10  ;;  %138 = vmatpush.msra.mxu0 %v113_v10 }
  0x24   :  { %415 = vmatpush.msra.mxu3 %v234_v32  ;;  %247 = vmatpush.msra.mxu1 %v234_v32 }
  0x25   :  { %404 = vmatpush.msra.mxu2 %v112_v11  ;;  %139 = vmatpush.msra.mxu0 %v112_v11 }
  0x26   :  { %416 = vmatpush.msra.mxu3 %v233_v33  ;;  %248 = vmatpush.msra.mxu1 %v233_v33  ;;  %v432_v33 = vld [vmem:[%s655_s4] ss:$0 sm:$0xff]  ;;  %s572_s4 = smov [#allocation9]  }
  0x27   :  { %405 = vmatpush.msra.mxu2 %v111_v12  ;;  %140 = vmatpush.msra.mxu0 %v111_v12  ;;  %s377_s10 = sshll.u32 %s572_s4, 4  ;;  %s378_s10 = int_to_ptr.vmem [resolvable:$true] %s377_s10 }
  0x28   :  { %417 = vmatpush.msra.mxu3 %v232_v36  ;;  %249 = vmatpush.msra.mxu1 %v232_v36 }
  0x29   :  { %406 = vmatpush.msra.mxu2 %v110_v13  ;;  %141 = vmatpush.msra.mxu0 %v110_v13 }
  0x2a   :  { %418 = vmatpush.msra.mxu3 %v231_v37  ;;  %250 = vmatpush.msra.mxu1 %v231_v37 }
  0x2b   :  { %407 = vmatpush.msra.mxu2 %v109_v14  ;;  %142 = vmatpush.msra.mxu0 %v109_v14 }
  0x2c   :  { %419 = vmatpush.msra.mxu3 %v230_v38  ;;  %251 = vmatpush.msra.mxu1 %v230_v38 }
  0x2d   :  { %408 = vmatpush.msra.mxu2 %v108_v15  ;;  %143 = vmatpush.msra.mxu0 %v108_v15 }
  0x2e   :  { %168 = vmatmul.f32.vlgmr.msra.gmra.mxu2 %v100_v16  ;;  %144 = vmatmul.f32.vlgmr.msra.gmra.mxu0 %v92_v17 }
  0x2f   :  { %420 = vmatpush.msra.mxu3 %v229_v43  ;;  %252 = vmatpush.msra.mxu1 %v229_v43 }
  0x31   :  { %421 = vmatpush.msra.mxu3 %v228_v44  ;;  %253 = vmatpush.msra.mxu1 %v228_v44 }
  0x33   :  { %422 = vmatpush.msra.mxu3 %v227_v45  ;;  %254 = vmatpush.msra.mxu1 %v227_v45 }
  0x35   :  { %423 = vmatpush.msra.mxu3 %v226_v46  ;;  %255 = vmatpush.msra.mxu1 %v226_v46 }
  0x36   :  { %171 = vmatmul.f32.gmra.mxu2 %v101_v18  ;;  %147 = vmatmul.f32.gmra.mxu0 %v93_v19 }
  0x37   :  { %424 = vmatpush.msra.mxu3 %v225_v47  ;;  %256 = vmatpush.msra.mxu1 %v225_v47 }
  0x3e   :  { %174 = vmatmul.f32.gmra.mxu2 %v102_v20  ;;  %150 = vmatmul.f32.gmra.mxu0 %v94_v21 }
  0x46   :  { %177 = vmatmul.f32.gmra.mxu2 %v103_v22  ;;  %153 = vmatmul.f32.gmra.mxu0 %v95_v23 }
  0x4e   :  { %180 = vmatmul.f32.gmra.mxu2 %v104_v28  ;;  %156 = vmatmul.f32.gmra.mxu0 %v96_v29 }
  0x56   :  { %183 = vmatmul.f32.gmra.mxu2 %v105_v34  ;;  %159 = vmatmul.f32.gmra.mxu0 %v97_v35 }
  0x5e   :  { %186 = vmatmul.f32.gmra.mxu2 %v106_v39  ;;  %162 = vmatmul.f32.gmra.mxu0 %v98_v40 }
  0x66   :  { %189 = vmatmul.f32.gmra.mxu2 %v107_v41  ;;  %165 = vmatmul.f32.gmra.mxu0 %v99_v42 }
  0xab   :  { %v145_v49 = vpop.f32.mrf.mxu0 }
  0xac   :  { %v146_v50 = vadd.f32 %v624_v48, %v145_v49 }
  0xae   :  { %433 = vtanh.f32 %v146_v50 }
  0xb1   :  { %v169_v51 = vpop.f32.mrf.mxu2 }
  0xb2   :  { %v170_v52 = vadd.f32 %v624_v48, %v169_v51 }
  0xb3   :  { %v148_v53 = vpop.f32.mrf.mxu0 }
  0xb4   :  { %v434_v54 = vpop.eup %433  ;;  %435 = vtanh.f32 %v170_v52  ;;  %v149_v55 = vadd.f32 %v624_v48, %v148_v53 }
  0xb5   :  { %257 = vmatmul.f32.vlgmr.msra.gmra.mxu1 %v434_v54 }
  0xb6   :  { %437 = vtanh.f32 %v149_v55 }
  0xb9   :  { %v172_v56 = vpop.f32.mrf.mxu2 }
  0xba   :  { %v436_v57 = vpop.eup %435  ;;  %v173_v58 = vadd.f32 %v624_v48, %v172_v56 }
  0xbb   :  { %281 = vmatmul.f32.vlgmr.msra.gmra.mxu3 %v436_v57  ;;  %v151_v59 = vpop.f32.mrf.mxu0 }
  0xbc   :  { %v438_v60 = vpop.eup %437  ;;  %439 = vtanh.f32 %v173_v58  ;;  %v152_v61 = vadd.f32 %v624_v48, %v151_v59 }
  0xbd   :  { %260 = vmatmul.f32.gmra.mxu1 %v438_v60 }
  0xbe   :  { %441 = vtanh.f32 %v152_v61 }
  0xc1   :  { %v175_v62 = vpop.f32.mrf.mxu2 }
  0xc2   :  { %v440_v63 = vpop.eup %439  ;;  %v176_v0 = vadd.f32 %v624_v48, %v175_v62 }
  0xc3   :  { %284 = vmatmul.f32.gmra.mxu3 %v440_v63  ;;  %v154_v1 = vpop.f32.mrf.mxu0 }
  0xc4   :  { %v442_v2 = vpop.eup %441  ;;  %443 = vtanh.f32 %v176_v0  ;;  %v155_v3 = vadd.f32 %v624_v48, %v154_v1 }
  0xc5   :  { %263 = vmatmul.f32.gmra.mxu1 %v442_v2 }
  0xc6   :  { %445 = vtanh.f32 %v155_v3 }
  0xc9   :  { %v178_v4 = vpop.f32.mrf.mxu2 }
  0xca   :  { %v444_v5 = vpop.eup %443  ;;  %v179_v6 = vadd.f32 %v624_v48, %v178_v4 }
  0xcb   :  { %287 = vmatmul.f32.gmra.mxu3 %v444_v5  ;;  %v157_v7 = vpop.f32.mrf.mxu0 }
  0xcc   :  { %v446_v8 = vpop.eup %445  ;;  %447 = vtanh.f32 %v179_v6  ;;  %v158_v9 = vadd.f32 %v624_v48, %v157_v7 }
  0xcd   :  { %266 = vmatmul.f32.gmra.mxu1 %v446_v8 }
  0xce   :  { %449 = vtanh.f32 %v158_v9 }
  0xd1   :  { %v181_v10 = vpop.f32.mrf.mxu2 }
  0xd2   :  { %v448_v11 = vpop.eup %447  ;;  %v182_v12 = vadd.f32 %v624_v48, %v181_v10 }
  0xd3   :  { %290 = vmatmul.f32.gmra.mxu3 %v448_v11  ;;  %v160_v13 = vpop.f32.mrf.mxu0 }
  0xd4   :  { %v450_v14 = vpop.eup %449  ;;  %451 = vtanh.f32 %v182_v12  ;;  %v161_v15 = vadd.f32 %v624_v48, %v160_v13 }
  0xd5   :  { %269 = vmatmul.f32.gmra.mxu1 %v450_v14 }
  0xd6   :  { %453 = vtanh.f32 %v161_v15 }
  0xd9   :  { %v184_v16 = vpop.f32.mrf.mxu2 }
  0xda   :  { %v452_v17 = vpop.eup %451  ;;  %v185_v18 = vadd.f32 %v624_v48, %v184_v16 }
  0xdb   :  { %293 = vmatmul.f32.gmra.mxu3 %v452_v17  ;;  %v163_v19 = vpop.f32.mrf.mxu0 }
  0xdc   :  { %v454_v20 = vpop.eup %453  ;;  %455 = vtanh.f32 %v185_v18  ;;  %v164_v21 = vadd.f32 %v624_v48, %v163_v19 }
  0xdd   :  { %272 = vmatmul.f32.gmra.mxu1 %v454_v20 }
  0xde   :  { %457 = vtanh.f32 %v164_v21 }
  0xe1   :  { %v187_v22 = vpop.f32.mrf.mxu2 }
  0xe2   :  { %v456_v23 = vpop.eup %455  ;;  %v188_v24 = vadd.f32 %v624_v48, %v187_v22 }
  0xe3   :  { %296 = vmatmul.f32.gmra.mxu3 %v456_v23  ;;  %v166_v25 = vpop.f32.mrf.mxu0 }
  0xe4   :  { %v458_v26 = vpop.eup %457  ;;  %459 = vtanh.f32 %v188_v24  ;;  %v167_v27 = vadd.f32 %v624_v48, %v166_v25 }
  0xe5   :  { %275 = vmatmul.f32.gmra.mxu1 %v458_v26 }
  0xe6   :  { %461 = vtanh.f32 %v167_v27 }
  0xe9   :  { %v190_v28 = vpop.f32.mrf.mxu2 }
  0xea   :  { %v460_v29 = vpop.eup %459  ;;  %v191_v30 = vadd.f32 %v624_v48, %v190_v28 }
  0xeb   :  { %299 = vmatmul.f32.gmra.mxu3 %v460_v29 }
  0xec   :  { %v462_v31 = vpop.eup %461  ;;  %463 = vtanh.f32 %v191_v30 }
  0xed   :  { %278 = vmatmul.f32.gmra.mxu1 %v462_v31 }
  0xf2   :  { %v464_v32 = vpop.eup %463 }
  0xf3   :  { %302 = vmatmul.f32.gmra.mxu3 %v464_v32 }
 0x132   :  { %v258_v34 = vpop.f32.mrf.mxu1 }
 0x133   :  { %v306_v35 = vadd.f32 %v432_v33, %v258_v34 }
 0x135   :  { %357 = vst [vmem:[#allocation9] sm:$0xff] %v306_v35 }
 0x13a   :  { %v261_v36 = vpop.f32.mrf.mxu1 }
 0x13b   :  { %v307_v37 = vadd.f32 %v432_v33, %v261_v36 }
 0x13d   :  { %358 = vst [vmem:[#allocation9 + $0x8] sm:$0xff] %v307_v37 }
 0x13e   :  { %v282_v38 = vpop.f32.mrf.mxu3 }
 0x13f   :  { %v314_v39 = vadd.f32 %v432_v33, %v282_v38 }
 0x141   :  { %365 = vst [vmem:[#allocation9 + $0x40] sm:$0xff] %v314_v39 }
 0x142   :  { %v264_v40 = vpop.f32.mrf.mxu1 }
 0x143   :  { %v308_v41 = vadd.f32 %v432_v33, %v264_v40 }
 0x145   :  { %359 = vst [vmem:[#allocation9 + $0x10] sm:$0xff] %v308_v41 }
 0x146   :  { %v285_v42 = vpop.f32.mrf.mxu3 }
 0x147   :  { %v315_v43 = vadd.f32 %v432_v33, %v285_v42 }
 0x149   :  { %366 = vst [vmem:[#allocation9 + $0x48] sm:$0xff] %v315_v43 }
 0x14a   :  { %v267_v44 = vpop.f32.mrf.mxu1 }
 0x14b   :  { %v309_v45 = vadd.f32 %v432_v33, %v267_v44 }
 0x14d   :  { %360 = vst [vmem:[#allocation9 + $0x18] sm:$0xff] %v309_v45 }
 0x14e   :  { %v288_v46 = vpop.f32.mrf.mxu3 }
 0x14f   :  { %v316_v47 = vadd.f32 %v432_v33, %v288_v46 }
 0x151   :  { %367 = vst [vmem:[#allocation9 + $0x50] sm:$0xff] %v316_v47 }
 0x152   :  { %v270_v48 = vpop.f32.mrf.mxu1 }
 0x153   :  { %v310_v49 = vadd.f32 %v432_v33, %v270_v48 }
 0x155   :  { %361 = vst [vmem:[#allocation9 + $0x20] sm:$0xff] %v310_v49 }
 0x156   :  { %v291_v50 = vpop.f32.mrf.mxu3 }
 0x157   :  { %v317_v51 = vadd.f32 %v432_v33, %v291_v50 }
 0x159   :  { %368 = vst [vmem:[#allocation9 + $0x58] sm:$0xff] %v317_v51 }
 0x15a   :  { %v273_v52 = vpop.f32.mrf.mxu1 }
 0x15b   :  { %v311_v53 = vadd.f32 %v432_v33, %v273_v52 }
 0x15d   :  { %362 = vst [vmem:[#allocation9 + $0x28] sm:$0xff] %v311_v53 }
 0x15e   :  { %v294_v54 = vpop.f32.mrf.mxu3 }
 0x15f   :  { %v318_v55 = vadd.f32 %v432_v33, %v294_v54 }
 0x161   :  { %369 = vst [vmem:[#allocation9 + $0x60] sm:$0xff] %v318_v55 }
 0x162   :  { %v276_v56 = vpop.f32.mrf.mxu1 }
 0x163   :  { %v312_v57 = vadd.f32 %v432_v33, %v276_v56 }
 0x165   :  { %363 = vst [vmem:[#allocation9 + $0x30] sm:$0xff] %v312_v57 }
 0x166   :  { %v297_v58 = vpop.f32.mrf.mxu3 }
 0x167   :  { %v319_v59 = vadd.f32 %v432_v33, %v297_v58 }
 0x169   :  { %370 = vst [vmem:[#allocation9 + $0x68] sm:$0xff] %v319_v59 }
 0x16a   :  { %v279_v60 = vpop.f32.mrf.mxu1 }
 0x16b   :  { %v313_v61 = vadd.f32 %v432_v33, %v279_v60 }
 0x16d   :  { %364 = vst [vmem:[#allocation9 + $0x38] sm:$0xff] %v313_v61 }
 0x16e   :  { %v300_v62 = vpop.f32.mrf.mxu3 }
 0x16f   :  { %v320_v63 = vadd.f32 %v432_v33, %v300_v62 }
 0x171   :  { %371 = vst [vmem:[#allocation9 + $0x70] sm:$0xff] %v320_v63 }
 0x176   :  { %v303_v0 = vpop.f32.mrf.mxu3 }
 0x177   :  { %v321_v1 = vadd.f32 %v432_v33, %v303_v0 }
 0x179   :  { %372 = vst [vmem:[#allocation9 + $0x78] sm:$0xff] %v321_v1 }
 0x17a   :  { %385 = dma.vmem_to_hbm [thread:$0]  %s378_s10, 2048, %s380_s13, [#allocation5], %s568_s26, %s568_s26, %s569_s27  }
 0x17b   :  { %565 = dma.done.wait [#allocation5], 2048  }
 0x17c   :  { %566 = vsyncadd [#allocation5], 4294965248 }
 0x17d   :  { %390 = vsyncpa [#allocation4], 1 }
 0x17e   :  { %391 = vsyncpa [#allocation7], 1 }
 0x17f   :  { %392 = vsyncpa [#allocation5], 1 }

</bundles_post_ra>
